<compile_context>
chip_gen: v6e
topology: v6e:2x2x1
jax: 0.10.0
libtpu: 0.0.40
codegen_flags: <defaults>
</compile_context>

<pallas_src>
import numpy as np
import jax
import jax.numpy as jnp
from jax import lax
from jax.experimental import pallas as pl
from jax.experimental.pallas import tpu as pltpu


def _vmem_limit(nbytes):
    # double-buffer headroom, clamped to a v7x-safe scoped budget (<= 32 MiB)
    return int(min(max(2 * nbytes + (1 << 20), 4 << 20), 32 << 20))


def mp_embedding(x, weight, eps=1e-4):
    in_channels, out_channels = weight.shape
    C, D = int(in_channels), int(out_channels)
    itemsize = jnp.dtype(weight.dtype).itemsize
    w_bytes = C * D * itemsize

    # TODO(synk): tables that do not fit VMEM (>~24 MiB) need a manual
    # multi-buffered DMA row gather (memory_space=pl.ANY + make_async_copy);
    # class-label-sized embedding tables fit comfortably, so it is not done here.

    # ---------------- kernel 1: tiled sum of squares (||W||_F^2) ----------------
    TR = C if C <= 512 else 512            # full table if small, else 512-row tiles
    n_row_tiles = pl.cdiv(C, TR)
    needs_mask = (C % TR) != 0             # static: ragged tail tile must be masked

    def _sumsq_kernel(w_ref, out_ref):
        i = pl.program_id(0)

        @pl.when(i == 0)
        def _init():
            out_ref[...] = jnp.zeros_like(out_ref)

        w = w_ref[...].astype(jnp.float32)          # cast in-kernel, raw weight in
        if needs_mask:
            rows = i * TR + lax.broadcasted_iota(jnp.int32, w.shape, 0)
            w = jnp.where(rows < C, w, 0.0)
        out_ref[...] += jnp.sum(w * w, keepdims=True)

    sumsq = pl.pallas_call(
        _sumsq_kernel,
        out_shape=jax.ShapeDtypeStruct((1, 1), jnp.float32),
        grid_spec=pltpu.PrefetchScalarGridSpec(
            num_scalar_prefetch=0,
            grid=(n_row_tiles,),
            in_specs=[pl.BlockSpec((TR, D), lambda i: (i, 0))],
            out_specs=pl.BlockSpec((1, 1), lambda i: (0, 0)),
        ),
        compiler_params=pltpu.CompilerParams(
            dimension_semantics=("arbitrary",),          # reduction axis
            vmem_limit_bytes=_vmem_limit(TR * D * itemsize),
        ),
    )(weight)

    # ---------------- kernel 2: batched normalized row gather ----------------
    idx_flat = x.reshape(-1).astype(jnp.int32)
    t = int(idx_flat.shape[0])
    TB = min(256, max(8, ((t + 7) // 8) * 8))      # sublane-dense index tile
    n_tiles = pl.cdiv(t, TB)
    t_pad = n_tiles * TB
    if t_pad != t:
        idx_flat = jnp.pad(idx_flat, (0, t_pad - t))   # pad with row 0 (always valid)

    inv_sqrt_numel = float(np.sqrt(1.0 / (C * D)))

    def _gather_kernel(idx_ref, sumsq_ref, w_ref, out_ref):
        g = pl.program_id(0)
        # normalize(w, dim=None): denom = eps + ||w|| * sqrt(1 / numel)
        ss = sumsq_ref[...]                                   # (1, 1) f32, vector form
        scale = 1.0 / (eps + jnp.sqrt(ss) * inv_sqrt_numel)   # exact (no approx recip)
        scale_row = jnp.broadcast_to(scale, (1, D))           # hoisted out of the loop

        def body(i, carry):
            row = idx_ref[g * TB + i]                 # scalar index from SMEM prefetch
            row = jnp.clip(row, 0, C - 1)             # guard out-of-range indices
            vals = w_ref[pl.ds(row, 1), :].astype(jnp.float32) * scale_row
            out_ref[pl.ds(i, 1), :] = vals.astype(out_ref.dtype)
            return carry

        lax.fori_loop(0, TB, body, 0)

    out = pl.pallas_call(
        _gather_kernel,
        out_shape=jax.ShapeDtypeStruct((t_pad, D), weight.dtype),
        grid_spec=pltpu.PrefetchScalarGridSpec(
            num_scalar_prefetch=1,                               # int32 indices -> SMEM
            grid=(n_tiles,),
            in_specs=[
                pl.BlockSpec((1, 1), lambda g, idx: (0, 0)),      # sumsq scalar (VMEM)
                pl.BlockSpec((C, D), lambda g, idx: (0, 0)),      # full table, resident
            ],
            out_specs=pl.BlockSpec((TB, D), lambda g, idx: (g, 0)),
        ),
        compiler_params=pltpu.CompilerParams(
            dimension_semantics=("parallel",),        # disjoint output tiles (2 TCs on v7x)
            vmem_limit_bytes=_vmem_limit(w_bytes + TB * D * 4),
        ),
    )(idx_flat, sumsq, weight)

    # TODO(synk): the in-place `self.weight.copy_(normalize(w))` parameter update is a
    # training-time side effect with no functional Pallas equivalent; the normalized
    # table is exactly what is gathered above, matching the module's return value.
    return out[:t].reshape(x.shape + (D,))


if __name__ == "__main__":
    in_channels = 16      # number of embedding rows (e.g. class labels)
    out_channels = 128    # embedding width (lane-friendly)
    batch, seq = 2, 8
    eps = 1e-4

    key = jax.random.PRNGKey(0)
    kw, kx = jax.random.split(key)
    weight = jax.random.normal(kw, (in_channels, out_channels), dtype=jnp.float32)
    x = jax.random.randint(kx, (batch, seq), 0, in_channels, dtype=jnp.int32)

    out = jax.block_until_ready(mp_embedding(x, weight, eps=eps))

    # pure-JAX reference of the same forward
    w32 = weight.astype(jnp.float32)
    ref_denom = eps + jnp.sqrt(jnp.sum(w32 * w32)) * np.sqrt(
        1.0 / (in_channels * out_channels))
    ref = (w32 / ref_denom)[x]

    assert out.shape == (batch, seq, out_channels)
    assert out.dtype == jnp.float32
    np.testing.assert_allclose(np.asarray(out), np.asarray(ref),
                               rtol=1e-5, atol=1e-5)
    print("KERNEL_OK")
</pallas_src>

<mosaic_0001>
module attributes {stable_mosaic.version = 11 : i64} {
  func.func @_sumsq_kernel(%arg0: i32, %arg1: memref<16x128xf32, #tpu.memory_space<vmem>>, %arg2: memref<1x1xf32, #tpu.memory_space<vmem>>) attributes {dimension_semantics = [#tpu.dimension_semantics<arbitrary>], iteration_bounds = array<i64: 1>, scalar_prefetch = 0 : i64, scratch_operands = 0 : i64, tpu.core_type = #tpu.core_type<tc>, window_params = [{transform_indices = @transform_0, window_bounds = array<i64: 16, 128>}, {pipeline_mode = #tpu.pipeline_mode<synchronous>, transform_indices = @transform_1, window_bounds = array<i64: 1, 1>}]} {
    %c0_i32 = arith.constant 0 : i32
    %0 = arith.cmpi eq, %arg0, %c0_i32 : i32
    %1 = arith.extui %0 : i1 to i32
    %c0_i32_0 = arith.constant 0 : i32
    %2 = arith.cmpi ne, %1, %c0_i32_0 : i32
    scf.if %2 {
      %cst_6 = arith.constant 0.000000e+00 : f32
      %13 = vector.broadcast %cst_6 : f32 to vector<1x1xf32>
      %c0_7 = arith.constant 0 : index
      %c0_8 = arith.constant 0 : index
      %14 = vector.load %arg2[%c0_7, %c0_8] : memref<1x1xf32, #tpu.memory_space<vmem>>, vector<1x1xf32>
      tpu.vector_store %arg2[%c0_7, %c0_8], %13 {strides = array<i32>} : memref<1x1xf32, #tpu.memory_space<vmem>>, vector<1x1xf32>,
    } else {
    }
    %c0 = arith.constant 0 : index
    %c0_1 = arith.constant 0 : index
    %3 = vector.load %arg1[%c0, %c0_1] : memref<16x128xf32, #tpu.memory_space<vmem>>, vector<16x128xf32>
    %c0_2 = arith.constant 0 : index
    %c0_3 = arith.constant 0 : index
    %4 = vector.load %arg2[%c0_2, %c0_3] : memref<1x1xf32, #tpu.memory_space<vmem>>, vector<1x1xf32>
    %5 = arith.mulf %3, %3 : vector<16x128xf32>
    %6 = vector.shape_cast %5 : vector<16x128xf32> to vector<1x16x128xf32>
    %cst = arith.constant dense<0.000000e+00> : vector<1xf32>
    %7 = vector.multi_reduction <add>, %6, %cst [1, 2] : vector<1x16x128xf32> to vector<1xf32>
    %8 = vector.shape_cast %7 : vector<1xf32> to vector<1x1x1xf32>
    %9 = vector.extract %8[0, 0, 0] : f32 from vector<1x1x1xf32>
    %10 = vector.broadcast %9 : f32 to vector<1x1xf32>
    %11 = arith.addf %4, %10 : vector<1x1xf32>
    %c0_4 = arith.constant 0 : index
    %c0_5 = arith.constant 0 : index
    %12 = vector.load %arg2[%c0_4, %c0_5] : memref<1x1xf32, #tpu.memory_space<vmem>>, vector<1x1xf32>
    tpu.vector_store %arg2[%c0_4, %c0_5], %11 {strides = array<i32>} : memref<1x1xf32, #tpu.memory_space<vmem>>, vector<1x1xf32>,
    return
  }
  func.func @transform_0(%arg0: i32) -> (i32, i32) {
    %c0_i32 = arith.constant 0 : i32
    %c0_i32_0 = arith.constant 0 : i32
    return %arg0, %c0_i32 : i32, i32
  }
  func.func @transform_1(%arg0: i32) -> (i32, i32) {
    %c0_i32 = arith.constant 0 : i32
    %c0_i32_0 = arith.constant 0 : i32
    %c0_i32_1 = arith.constant 0 : i32
    return %c0_i32, %c0_i32_0 : i32, i32
  }
}

</mosaic_0001>

<bundles_post_ra>
// kernel: tpu_custom_call.1
= control target key start
LH: loop header
LB: loop body
LE: loop exit
PB: predicated region body
PF: predicated region fallthrough
CT: control target
= control target key end

     0   :  { %6 = vsyncpa [#allocation3], 0  ;;  %s137_s0 = inlined_call_operand.hbm [shape: f32[16,128], index: 0, kind: input, shape index: {}]   ;;  %s138_s1 = inlined_call_operand.hbm [shape: f32[1,1], index: 1, kind: output, shape index: {}]  }
   0x1   :  { %7 = vsyncpa [#allocation4], 0  ;;  %s114_s6 = smov [#allocation2]  }
   0x2   :  { %s13_s7 = sshll.u32 %s114_s6, 4  ;;  %s14_s7 = int_to_ptr.vmem [resolvable:$true] %s13_s7 }
   0x3   :  { %s78_s8 = scalar_lea.vmem %s14_s7, 256  ;;  %p83_p1 = scmp.lt.s32.totalorder %s14_s7, %s14_s7 }
   0x4   :  { %p79_p0 = scmp.ne.s32.totalorder %s14_s7, %s78_s8  ;;  %p84_p2 = scmp.lt.s32.totalorder %s78_s8, %s78_s8 }
   0x6   :  { %p85_p3 = por %p84_p2, %p83_p1 }
   0x8   :  { %p86_p4 = pnand %p85_p3, %p79_p0 }
   0xa   :  { %89 = shalt.err (!%p86_p4)
}
   0xb   :  { %s115_s9 = smov 128   ;;  %s116_s10 = smov 8  }
   0xc   :  { %19 = dma.hbm_to_vmem [thread:$0]  %s137_s0, 256, %s14_s7, [#allocation3], %s115_s9, %s115_s9, %s116_s10  }
   0xd   :  { %110 = dma.done.wait [#allocation3], 256  }
   0xe   :  { %111 = vsyncadd [#allocation3], 4294967040  ;;  %vm27_vm0 = vcmask 0   ;;  %v117_v0 = vmov 0.0   ;;  %v29_v1 = vld [vmem:[#allocation2] sm:$0xff]  ;;  %v30_v2 = vld [vmem:[#allocation2 + $0x8] sm:$0xff] }
   0xf   :  { %28 = vst.msk [vmem:[#allocation5] sm:$0x1] %vm27_vm0, %v117_v0  ;;  %v32_v3 = vmul.f32 %v29_v1, %v29_v1  ;;  %v33_v4 = vmul.f32 %v30_v2, %v30_v2  ;;  %s118_s0 = smov [#allocation5]  }
  0x10   :  { %s54_s13 = sshll.u32 %s118_s0, 4  ;;  %s55_s13 = int_to_ptr.vmem [resolvable:$true] %s54_s13 }
  0x11   :  { %v34_v5 = vadd.f32 %v33_v4, %v32_v3  ;;  %s90_s15 = scalar_lea.vmem %s55_s13, 16  ;;  %s94_s16 = scalar_lea.vmem %s55_s13, 32 }
  0x12   :  { %p91_p5 = scmp.ne.s32.totalorder %s55_s13, %s90_s15  ;;  %p95_p6 = scmp.lt.s32.totalorder %s55_s13, %s55_s13 }
  0x13   :  { %35 = vadd.xlane.f32.xlu0 %v34_v5  ;;  %p96_p7 = scmp.lt.s32.totalorder %s94_s16, %s90_s15 }
  0x15   :  { %p97_p8 = por %p96_p7, %p95_p6 }
  0x16   :  { %v31_v13 = vld [vmem:[#allocation5] sm:$0x1] }
  0x17   :  { %p98_p9 = pnand %p97_p8, %p91_p5 }
  0x9c   :  { %v36_v6 = vpop.xlane.xlu0 %35 }
  0x9d   :  { %v37_v7 = vrot.slane %v36_v6, 4 }
  0x9f   :  { %v38_v8 = vadd.f32 %v37_v7, %v36_v6 }
  0xa1   :  { %v39_v9 = vrot.slane %v38_v8, 2 }
  0xa3   :  { %v40_v10 = vadd.f32 %v39_v9, %v38_v8 }
  0xa5   :  { %v41_v11 = vrot.slane %v40_v10, 1 }
  0xa7   :  { %v42_v12 = vadd.f32 %v41_v11, %v40_v10 }
  0xa9   :  { %63 = vpush %v42_v12 }
  0xda   :  { %s64_s14 = spop %63 }
  0xdb   :  { %v44_v14 = vstv %s64_s14 }
  0xdc   :  { %v45_v15 = vadd.f32 %v44_v14, %v31_v13 }
  0xde   :  { %47 = vst.msk [vmem:[#allocation5] sm:$0x1] %vm27_vm0, %v45_v15 }
  0xdf   :  { %101 = shalt.err (!%p98_p9)
}
  0xe0   :  { %57 = dma.vmem_to_hbm [thread:$0]  %s55_s13, 16, %s138_s1, [#allocation4]  }
  0xe1   :  { %112 = dma.done.wait [#allocation4], 16  }
  0xe2   :  { %113 = vsyncadd [#allocation4], 4294967280 }
  0xe3   :  { %61 = vsyncpa [#allocation3], 1 }
  0xe4   :  { %62 = vsyncpa [#allocation4], 1 }

</bundles_post_ra>
